<compile_context>
chip_gen: v7x
topology: tpu7x:2x2x1
jax: 0.10.0
libtpu: 0.0.40
codegen_flags: <defaults>
</compile_context>

<pallas_src>
import functools

import jax
import jax.numpy as jnp
from jax import lax
from jax.experimental import pallas as pl
from jax.experimental.pallas import tpu as pltpu


def _dk_kernel(x_ref, w_ref, o_ref, *, N, C_in, C_out, H_out, W_out):
    # x_ref: (N*3*2, C_in, Hp2*W_out)  column-tap / row-phase layout
    # w_ref: (9, C_out, C_in)          per-tap weight slabs, t = kh*3 + kw
    # o_ref: (N, C_out, P)             P = H_out*W_out (lane-dense last dim)
    P = H_out * W_out
    inv_p = 1.0 / float(P)
    for n in range(N):
        conv = None
        for kh in range(3):
            rp, ro = kh % 2, kh // 2
            for kw in range(3):
                t = kh * 3 + kw
                slab = (n * 3 + kw) * 2 + rp
                # Contiguous, lane-dense (C_in, P) slice for this conv tap.
                x_t = x_ref[slab, :, ro * W_out: ro * W_out + P]
                w_t = w_ref[t]                                    # (C_out, C_in)
                d = jnp.dot(w_t, x_t, preferred_element_type=jnp.float32)
                conv = d if conv is None else conv + d            # (C_out, P)
        # InstanceNorm2d(affine=False), eps=1e-5: per-(sample, channel) stats
        # over P in one pass; biased variance. Conv bias omitted (cancels).
        mean = jnp.sum(conv, axis=1, keepdims=True) * inv_p
        ex2 = jnp.sum(conv * conv, axis=1, keepdims=True) * inv_p
        var = ex2 - mean * mean
        normed = (conv - mean) * lax.rsqrt(var + 1e-5)
        o_ref[n] = jnp.maximum(normed, 0.0)                       # ReLU


def dk_block_forward(x_nchw, weight, bias=None):
    """x_nchw: (N, C_in, H, W); weight: (C_out, C_in, 3, 3); bias: (C_out,).

    bias is accepted for API parity but unused: InstanceNorm2d(affine=False)
    subtracts the per-channel mean, so a per-channel conv bias cancels exactly.
    """
    del bias
    N, C_in, H, W = x_nchw.shape
    C_out = weight.shape[0]
    assert H >= 2 and W >= 2, "reflect padding needs H, W >= 2"
    assert H % 2 == 0 and W % 2 == 0, "phase-split layout assumes even H, W"
    H_out, W_out = H // 2, W // 2
    P = H_out * W_out
    Hp2 = H_out + 1  # rows per row-phase of the reflect-padded image

    x = x_nchw.astype(jnp.float32)
    x_pad = jnp.pad(x, ((0, 0), (0, 0), (1, 1), (1, 1)), mode="reflect")  # (N,C,H+2,W+2)

    # Column-tap / row-phase layout (glue, ~1.5x input bytes, no im2col):
    #   xv[(n*3 + kw)*2 + rp, c, r2*W_out + j] = x_pad[n, c, 2*r2 + rp, kw + 2*j]
    # so conv tap (kh, kw) reads the contiguous block
    #   xv[slab, :, (kh//2)*W_out : (kh//2)*W_out + P]   with rp = kh % 2.
    cols = []
    for kw in range(3):
        b = x_pad[:, :, :, kw::2][:, :, :, :W_out]           # (N, C, H+2, W_out)
        b = b.reshape(N, C_in, Hp2, 2, W_out)                # rows -> (r2, rp)
        cols.append(jnp.transpose(b, (0, 3, 1, 2, 4)))       # (N, 2, C, Hp2, W_out)
    xv = jnp.stack(cols, axis=1)                             # (N, 3, 2, C, Hp2, W_out)
    xv = xv.reshape(N * 3 * 2, C_in, Hp2 * W_out)

    # (C_out, C_in, 3, 3) -> (9, C_out, C_in) per-tap weight slabs.
    w_taps = jnp.transpose(weight, (2, 3, 0, 1)).reshape(9, C_out, C_in).astype(jnp.float32)

    kernel = functools.partial(_dk_kernel, N=N, C_in=C_in, C_out=C_out,
                               H_out=H_out, W_out=W_out)

    out = pl.pallas_call(
        kernel,
        out_shape=jax.ShapeDtypeStruct((N, C_out, P), jnp.float32),
        grid_spec=pltpu.PrefetchScalarGridSpec(
            num_scalar_prefetch=0,
            grid=(1,),                                        # whole batch in one step
            in_specs=[
                pl.BlockSpec((N * 6, C_in, Hp2 * W_out), lambda i: (0, 0, 0)),
                pl.BlockSpec((9, C_out, C_in), lambda i: (0, 0, 0)),
            ],
            out_specs=pl.BlockSpec((N, C_out, P), lambda i: (0, 0, 0)),
        ),
        compiler_params=pltpu.CompilerParams(dimension_semantics=("arbitrary",)),
    )(xv, w_taps)

    # (N, C_out, P) is already channel-major: a pure reshape gives NCHW.
    return out.reshape(N, C_out, H_out, W_out)


def _reference(x_nchw, weight, bias):
    # Pure-JAX reference (reflect pad + VALID conv stride 2 + bias + instance norm + relu).
    x_pad = jnp.pad(x_nchw, ((0, 0), (0, 0), (1, 1), (1, 1)), mode="reflect")
    conv = lax.conv_general_dilated(
        x_pad.astype(jnp.float32), weight.astype(jnp.float32),
        window_strides=(2, 2), padding="VALID",
        dimension_numbers=("NCHW", "OIHW", "NCHW"))
    conv = conv + bias.reshape(1, -1, 1, 1)
    mean = jnp.mean(conv, axis=(2, 3), keepdims=True)
    var = jnp.mean((conv - mean) ** 2, axis=(2, 3), keepdims=True)
    normed = (conv - mean) * lax.rsqrt(var + 1e-5)
    return jnp.maximum(normed, 0.0)


if __name__ == "__main__":
    key = jax.random.PRNGKey(0)
    N, C_in, C_out, H, W = 2, 4, 8, 16, 16

    kx, k_w, k_b = jax.random.split(key, 3)
    x = jax.random.normal(kx, (N, C_in, H, W), dtype=jnp.float32)
    fan_in = C_in * 3 * 3
    weight = jax.random.normal(k_w, (C_out, C_in, 3, 3), dtype=jnp.float32) / jnp.sqrt(fan_in)
    bias = jax.random.normal(k_b, (C_out,), dtype=jnp.float32) * 0.1

    out = jax.block_until_ready(dk_block_forward(x, weight, bias))
    ref = jax.block_until_ready(_reference(x, weight, bias))

    assert out.shape == (N, C_out, H // 2, W // 2), out.shape
    max_err = float(jnp.max(jnp.abs(out - ref)))
    assert jnp.allclose(out, ref, atol=2e-4, rtol=2e-4), max_err

    print("KERNEL_OK")
</pallas_src>

<mosaic_0001>
module attributes {stable_mosaic.version = 11 : i64} {
  func.func @_dk_kernel(%arg0: i32, %arg1: memref<12x4x72xf32, #tpu.memory_space<vmem>>, %arg2: memref<9x8x4xf32, #tpu.memory_space<vmem>>, %arg3: memref<2x8x64xf32, #tpu.memory_space<vmem>>) attributes {dimension_semantics = [#tpu.dimension_semantics<arbitrary>], iteration_bounds = array<i64: 1>, scalar_prefetch = 0 : i64, scratch_operands = 0 : i64, tpu.core_type = #tpu.core_type<tc>, window_params = [{pipeline_mode = #tpu.pipeline_mode<synchronous>, transform_indices = @transform_0, window_bounds = array<i64: 12, 4, 72>}, {pipeline_mode = #tpu.pipeline_mode<synchronous>, transform_indices = @transform_1, window_bounds = array<i64: 9, 8, 4>}, {pipeline_mode = #tpu.pipeline_mode<synchronous>, transform_indices = @transform_2, window_bounds = array<i64: 2, 8, 64>}]} {
    %c0 = arith.constant 0 : index
    %c0_0 = arith.constant 0 : index
    %c0_1 = arith.constant 0 : index
    %0 = vector.load %arg1[%c0, %c0_0, %c0_1] : memref<12x4x72xf32, #tpu.memory_space<vmem>>, vector<1x4x64xf32>
    %1 = vector.shape_cast %0 : vector<1x4x64xf32> to vector<4x64xf32>
    %c0_2 = arith.constant 0 : index
    %c0_3 = arith.constant 0 : index
    %c0_4 = arith.constant 0 : index
    %2 = vector.load %arg2[%c0_2, %c0_3, %c0_4] : memref<9x8x4xf32, #tpu.memory_space<vmem>>, vector<1x8x4xf32>
    %3 = vector.shape_cast %2 : vector<1x8x4xf32> to vector<8x4xf32>
    %cst = arith.constant dense<0.000000e+00> : vector<8x64xf32>
    %4 = tpu.matmul %3, %1, %cst {dimension_numbers = #tpu.dot_dimension_numbers<[1], [0], [0], [1], [0, 0, 1, 1], [], []>} : vector<8x4xf32>, vector<4x64xf32>, vector<8x64xf32> -> vector<8x64xf32>
    %c2 = arith.constant 2 : index
    %c0_5 = arith.constant 0 : index
    %c0_6 = arith.constant 0 : index
    %5 = vector.load %arg1[%c2, %c0_5, %c0_6] : memref<12x4x72xf32, #tpu.memory_space<vmem>>, vector<1x4x64xf32>
    %6 = vector.shape_cast %5 : vector<1x4x64xf32> to vector<4x64xf32>
    %c1 = arith.constant 1 : index
    %c0_7 = arith.constant 0 : index
    %c0_8 = arith.constant 0 : index
    %7 = vector.load %arg2[%c1, %c0_7, %c0_8] : memref<9x8x4xf32, #tpu.memory_space<vmem>>, vector<1x8x4xf32>
    %8 = vector.shape_cast %7 : vector<1x8x4xf32> to vector<8x4xf32>
    %cst_9 = arith.constant dense<0.000000e+00> : vector<8x64xf32>
    %9 = tpu.matmul %8, %6, %cst_9 {dimension_numbers = #tpu.dot_dimension_numbers<[1], [0], [0], [1], [0, 0, 1, 1], [], []>} : vector<8x4xf32>, vector<4x64xf32>, vector<8x64xf32> -> vector<8x64xf32>
    %10 = arith.addf %4, %9 : vector<8x64xf32>
    %c4 = arith.constant 4 : index
    %c0_10 = arith.constant 0 : index
    %c0_11 = arith.constant 0 : index
    %11 = vector.load %arg1[%c4, %c0_10, %c0_11] : memref<12x4x72xf32, #tpu.memory_space<vmem>>, vector<1x4x64xf32>
    %12 = vector.shape_cast %11 : vector<1x4x64xf32> to vector<4x64xf32>
    %c2_12 = arith.constant 2 : index
    %c0_13 = arith.constant 0 : index
    %c0_14 = arith.constant 0 : index
    %13 = vector.load %arg2[%c2_12, %c0_13, %c0_14] : memref<9x8x4xf32, #tpu.memory_space<vmem>>, vector<1x8x4xf32>
    %14 = vector.shape_cast %13 : vector<1x8x4xf32> to vector<8x4xf32>
    %cst_15 = arith.constant dense<0.000000e+00> : vector<8x64xf32>
    %15 = tpu.matmul %14, %12, %cst_15 {dimension_numbers = #tpu.dot_dimension_numbers<[1], [0], [0], [1], [0, 0, 1, 1], [], []>} : vector<8x4xf32>, vector<4x64xf32>, vector<8x64xf32> -> vector<8x64xf32>
    %16 = arith.addf %10, %15 : vector<8x64xf32>
    %c1_16 = arith.constant 1 : index
    %c0_17 = arith.constant 0 : index
    %c0_18 = arith.constant 0 : index
    %17 = vector.load %arg1[%c1_16, %c0_17, %c0_18] : memref<12x4x72xf32, #tpu.memory_space<vmem>>, vector<1x4x64xf32>
    %18 = vector.shape_cast %17 : vector<1x4x64xf32> to vector<4x64xf32>
    %c3 = arith.constant 3 : index
    %c0_19 = arith.constant 0 : index
    %c0_20 = arith.constant 0 : index
    %19 = vector.load %arg2[%c3, %c0_19, %c0_20] : memref<9x8x4xf32, #tpu.memory_space<vmem>>, vector<1x8x4xf32>
    %20 = vector.shape_cast %19 : vector<1x8x4xf32> to vector<8x4xf32>
    %cst_21 = arith.constant dense<0.000000e+00> : vector<8x64xf32>
    %21 = tpu.matmul %20, %18, %cst_21 {dimension_numbers = #tpu.dot_dimension_numbers<[1], [0], [0], [1], [0, 0, 1, 1], [], []>} : vector<8x4xf32>, vector<4x64xf32>, vector<8x64xf32> -> vector<8x64xf32>
    %22 = arith.addf %16, %21 : vector<8x64xf32>
    %c3_22 = arith.constant 3 : index
    %c0_23 = arith.constant 0 : index
    %c0_24 = arith.constant 0 : index
    %23 = vector.load %arg1[%c3_22, %c0_23, %c0_24] : memref<12x4x72xf32, #tpu.memory_space<vmem>>, vector<1x4x64xf32>
    %24 = vector.shape_cast %23 : vector<1x4x64xf32> to vector<4x64xf32>
    %c4_25 = arith.constant 4 : index
    %c0_26 = arith.constant 0 : index
    %c0_27 = arith.constant 0 : index
    %25 = vector.load %arg2[%c4_25, %c0_26, %c0_27] : memref<9x8x4xf32, #tpu.memory_space<vmem>>, vector<1x8x4xf32>
    %26 = vector.shape_cast %25 : vector<1x8x4xf32> to vector<8x4xf32>
    %cst_28 = arith.constant dense<0.000000e+00> : vector<8x64xf32>
    %27 = tpu.matmul %26, %24, %cst_28 {dimension_numbers = #tpu.dot_dimension_numbers<[1], [0], [0], [1], [0, 0, 1, 1], [], []>} : vector<8x4xf32>, vector<4x64xf32>, vector<8x64xf32> -> vector<8x64xf32>
    %28 = arith.addf %22, %27 : vector<8x64xf32>
    %c5 = arith.constant 5 : index
    %c0_29 = arith.constant 0 : index
    %c0_30 = arith.constant 0 : index
    %29 = vector.load %arg1[%c5, %c0_29, %c0_30] : memref<12x4x72xf32, #tpu.memory_space<vmem>>, vector<1x4x64xf32>
    %30 = vector.shape_cast %29 : vector<1x4x64xf32> to vector<4x64xf32>
    %c5_31 = arith.constant 5 : index
    %c0_32 = arith.constant 0 : index
    %c0_33 = arith.constant 0 : index
    %31 = vector.load %arg2[%c5_31, %c0_32, %c0_33] : memref<9x8x4xf32, #tpu.memory_space<vmem>>, vector<1x8x4xf32>
    %32 = vector.shape_cast %31 : vector<1x8x4xf32> to vector<8x4xf32>
    %cst_34 = arith.constant dense<0.000000e+00> : vector<8x64xf32>
    %33 = tpu.matmul %32, %30, %cst_34 {dimension_numbers = #tpu.dot_dimension_numbers<[1], [0], [0], [1], [0, 0, 1, 1], [], []>} : vector<8x4xf32>, vector<4x64xf32>, vector<8x64xf32> -> vector<8x64xf32>
    %34 = arith.addf %28, %33 : vector<8x64xf32>
    %c0_35 = arith.constant 0 : index
    %c0_36 = arith.constant 0 : index
    %c8 = arith.constant 8 : index
    %35 = vector.load %arg1[%c0_35, %c0_36, %c8] : memref<12x4x72xf32, #tpu.memory_space<vmem>>, vector<1x4x64xf32>
    %36 = vector.shape_cast %35 : vector<1x4x64xf32> to vector<4x64xf32>
    %c6 = arith.constant 6 : index
    %c0_37 = arith.constant 0 : index
    %c0_38 = arith.constant 0 : index
    %37 = vector.load %arg2[%c6, %c0_37, %c0_38] : memref<9x8x4xf32, #tpu.memory_space<vmem>>, vector<1x8x4xf32>
    %38 = vector.shape_cast %37 : vector<1x8x4xf32> to vector<8x4xf32>
    %cst_39 = arith.constant dense<0.000000e+00> : vector<8x64xf32>
    %39 = tpu.matmul %38, %36, %cst_39 {dimension_numbers = #tpu.dot_dimension_numbers<[1], [0], [0], [1], [0, 0, 1, 1], [], []>} : vector<8x4xf32>, vector<4x64xf32>, vector<8x64xf32> -> vector<8x64xf32>
    %40 = arith.addf %34, %39 : vector<8x64xf32>
    %c2_40 = arith.constant 2 : index
    %c0_41 = arith.constant 0 : index
    %c8_42 = arith.constant 8 : index
    %41 = vector.load %arg1[%c2_40, %c0_41, %c8_42] : memref<12x4x72xf32, #tpu.memory_space<vmem>>, vector<1x4x64xf32>
    %42 = vector.shape_cast %41 : vector<1x4x64xf32> to vector<4x64xf32>
    %c7 = arith.constant 7 : index
    %c0_43 = arith.constant 0 : index
    %c0_44 = arith.constant 0 : index
    %43 = vector.load %arg2[%c7, %c0_43, %c0_44] : memref<9x8x4xf32, #tpu.memory_space<vmem>>, vector<1x8x4xf32>
    %44 = vector.shape_cast %43 : vector<1x8x4xf32> to vector<8x4xf32>
    %cst_45 = arith.constant dense<0.000000e+00> : vector<8x64xf32>
    %45 = tpu.matmul %44, %42, %cst_45 {dimension_numbers = #tpu.dot_dimension_numbers<[1], [0], [0], [1], [0, 0, 1, 1], [], []>} : vector<8x4xf32>, vector<4x64xf32>, vector<8x64xf32> -> vector<8x64xf32>
    %46 = arith.addf %40, %45 : vector<8x64xf32>
    %c4_46 = arith.constant 4 : index
    %c0_47 = arith.constant 0 : index
    %c8_48 = arith.constant 8 : index
    %47 = vector.load %arg1[%c4_46, %c0_47, %c8_48] : memref<12x4x72xf32, #tpu.memory_space<vmem>>, vector<1x4x64xf32>
    %48 = vector.shape_cast %47 : vector<1x4x64xf32> to vector<4x64xf32>
    %c8_49 = arith.constant 8 : index
    %c0_50 = arith.constant 0 : index
    %c0_51 = arith.constant 0 : index
    %49 = vector.load %arg2[%c8_49, %c0_50, %c0_51] : memref<9x8x4xf32, #tpu.memory_space<vmem>>, vector<1x8x4xf32>
    %50 = vector.shape_cast %49 : vector<1x8x4xf32> to vector<8x4xf32>
    %cst_52 = arith.constant dense<0.000000e+00> : vector<8x64xf32>
    %51 = tpu.matmul %50, %48, %cst_52 {dimension_numbers = #tpu.dot_dimension_numbers<[1], [0], [0], [1], [0, 0, 1, 1], [], []>} : vector<8x4xf32>, vector<4x64xf32>, vector<8x64xf32> -> vector<8x64xf32>
    %52 = arith.addf %46, %51 : vector<8x64xf32>
    %cst_53 = arith.constant dense<0.000000e+00> : vector<8xf32>
    %53 = vector.multi_reduction <add>, %52, %cst_53 [1] : vector<8x64xf32> to vector<8xf32>
    %54 = vector.shape_cast %53 : vector<8xf32> to vector<8x1xf32>
    %cst_54 = arith.constant 1.562500e-02 : f32
    %55 = vector.broadcast %cst_54 : f32 to vector<8x1xf32>
    %56 = arith.mulf %54, %55 : vector<8x1xf32>
    %57 = arith.mulf %52, %52 : vector<8x64xf32>
    %cst_55 = arith.constant dense<0.000000e+00> : vector<8xf32>
    %58 = vector.multi_reduction <add>, %57, %cst_55 [1] : vector<8x64xf32> to vector<8xf32>
    %59 = vector.shape_cast %58 : vector<8xf32> to vector<8x1xf32>
    %cst_56 = arith.constant 1.562500e-02 : f32
    %60 = vector.broadcast %cst_56 : f32 to vector<8x1xf32>
    %61 = arith.mulf %59, %60 : vector<8x1xf32>
    %62 = arith.mulf %56, %56 : vector<8x1xf32>
    %63 = arith.subf %61, %62 : vector<8x1xf32>
    %64 = vector.broadcast %56 : vector<8x1xf32> to vector<8x64xf32>
    %65 = arith.subf %52, %64 : vector<8x64xf32>
    %cst_57 = arith.constant 9.99999974E-6 : f32
    %66 = vector.broadcast %cst_57 : f32 to vector<8x1xf32>
    %67 = arith.addf %63, %66 : vector<8x1xf32>
    %68 = math.rsqrt %67 : vector<8x1xf32>
    %69 = vector.broadcast %68 : vector<8x1xf32> to vector<8x64xf32>
    %70 = arith.mulf %65, %69 : vector<8x64xf32>
    %cst_58 = arith.constant 0.000000e+00 : f32
    %71 = vector.broadcast %cst_58 : f32 to vector<8x64xf32>
    %72 = arith.maximumf %70, %71 : vector<8x64xf32>
    %c0_59 = arith.constant 0 : index
    %c0_60 = arith.constant 0 : index
    %c0_61 = arith.constant 0 : index
    %73 = vector.load %arg3[%c0_59, %c0_60, %c0_61] : memref<2x8x64xf32, #tpu.memory_space<vmem>>, vector<1x8x64xf32>
    %74 = vector.shape_cast %73 : vector<1x8x64xf32> to vector<8x64xf32>
    %75 = vector.shape_cast %72 : vector<8x64xf32> to vector<1x8x64xf32>
    tpu.vector_store %arg3[%c0_59, %c0_60, %c0_61], %75 {strides = array<i32>} : memref<2x8x64xf32, #tpu.memory_space<vmem>>, vector<1x8x64xf32>,
    %c6_62 = arith.constant 6 : index
    %c0_63 = arith.constant 0 : index
    %c0_64 = arith.constant 0 : index
    %76 = vector.load %arg1[%c6_62, %c0_63, %c0_64] : memref<12x4x72xf32, #tpu.memory_space<vmem>>, vector<1x4x64xf32>
    %77 = vector.shape_cast %76 : vector<1x4x64xf32> to vector<4x64xf32>
    %c0_65 = arith.constant 0 : index
    %c0_66 = arith.constant 0 : index
    %c0_67 = arith.constant 0 : index
    %78 = vector.load %arg2[%c0_65, %c0_66, %c0_67] : memref<9x8x4xf32, #tpu.memory_space<vmem>>, vector<1x8x4xf32>
    %79 = vector.shape_cast %78 : vector<1x8x4xf32> to vector<8x4xf32>
    %cst_68 = arith.constant dense<0.000000e+00> : vector<8x64xf32>
    %80 = tpu.matmul %79, %77, %cst_68 {dimension_numbers = #tpu.dot_dimension_numbers<[1], [0], [0], [1], [0, 0, 1, 1], [], []>} : vector<8x4xf32>, vector<4x64xf32>, vector<8x64xf32> -> vector<8x64xf32>
    %c8_69 = arith.constant 8 : index
    %c0_70 = arith.constant 0 : index
    %c0_71 = arith.constant 0 : index
    %81 = vector.load %arg1[%c8_69, %c0_70, %c0_71] : memref<12x4x72xf32, #tpu.memory_space<vmem>>, vector<1x4x64xf32>
    %82 = vector.shape_cast %81 : vector<1x4x64xf32> to vector<4x64xf32>
    %c1_72 = arith.constant 1 : index
    %c0_73 = arith.constant 0 : index
    %c0_74 = arith.constant 0 : index
    %83 = vector.load %arg2[%c1_72, %c0_73, %c0_74] : memref<9x8x4xf32, #tpu.memory_space<vmem>>, vector<1x8x4xf32>
    %84 = vector.shape_cast %83 : vector<1x8x4xf32> to vector<8x4xf32>
    %cst_75 = arith.constant dense<0.000000e+00> : vector<8x64xf32>
    %85 = tpu.matmul %84, %82, %cst_75 {dimension_numbers = #tpu.dot_dimension_numbers<[1], [0], [0], [1], [0, 0, 1, 1], [], []>} : vector<8x4xf32>, vector<4x64xf32>, vector<8x64xf32> -> vector<8x64xf32>
    %86 = arith.addf %80, %85 : vector<8x64xf32>
    %c10 = arith.constant 10 : index
    %c0_76 = arith.constant 0 : index
    %c0_77 = arith.constant 0 : index
    %87 = vector.load %arg1[%c10, %c0_76, %c0_77] : memref<12x4x72xf32, #tpu.memory_space<vmem>>, vector<1x4x64xf32>
    %88 = vector.shape_cast %87 : vector<1x4x64xf32> to vector<4x64xf32>
    %c2_78 = arith.constant 2 : index
    %c0_79 = arith.constant 0 : index
    %c0_80 = arith.constant 0 : index
    %89 = vector.load %arg2[%c2_78, %c0_79, %c0_80] : memref<9x8x4xf32, #tpu.memory_space<vmem>>, vector<1x8x4xf32>
    %90 = vector.shape_cast %89 : vector<1x8x4xf32> to vector<8x4xf32>
    %cst_81 = arith.constant dense<0.000000e+00> : vector<8x64xf32>
    %91 = tpu.matmul %90, %88, %cst_81 {dimension_numbers = #tpu.dot_dimension_numbers<[1], [0], [0], [1], [0, 0, 1, 1], [], []>} : vector<8x4xf32>, vector<4x64xf32>, vector<8x64xf32> -> vector<8x64xf32>
    %92 = arith.addf %86, %91 : vector<8x64xf32>
    %c7_82 = arith.constant 7 : index
    %c0_83 = arith.constant 0 : index
    %c0_84 = arith.constant 0 : index
    %93 = vector.load %arg1[%c7_82, %c0_83, %c0_84] : memref<12x4x72xf32, #tpu.memory_space<vmem>>, vector<1x4x64xf32>
    %94 = vector.shape_cast %93 : vector<1x4x64xf32> to vector<4x64xf32>
    %c3_85 = arith.constant 3 : index
    %c0_86 = arith.constant 0 : index
    %c0_87 = arith.constant 0 : index
    %95 = vector.load %arg2[%c3_85, %c0_86, %c0_87] : memref<9x8x4xf32, #tpu.memory_space<vmem>>, vector<1x8x4xf32>
    %96 = vector.shape_cast %95 : vector<1x8x4xf32> to vector<8x4xf32>
    %cst_88 = arith.constant dense<0.000000e+00> : vector<8x64xf32>
    %97 = tpu.matmul %96, %94, %cst_88 {dimension_numbers = #tpu.dot_dimension_numbers<[1], [0], [0], [1], [0, 0, 1, 1], [], []>} : vector<8x4xf32>, vector<4x64xf32>, vector<8x64xf32> -> vector<8x64xf32>
    %98 = arith.addf %92, %97 : vector<8x64xf32>
    %c9 = arith.constant 9 : index
    %c0_89 = arith.constant 0 : index
    %c0_90 = arith.constant 0 : index
    %99 = vector.load %arg1[%c9, %c0_89, %c0_90] : memref<12x4x72xf32, #tpu.memory_space<vmem>>, vector<1x4x64xf32>
    %100 = vector.shape_cast %99 : vector<1x4x64xf32> to vector<4x64xf32>
    %c4_91 = arith.constant 4 : index
    %c0_92 = arith.constant 0 : index
    %c0_93 = arith.constant 0 : index
    %101 = vector.load %arg2[%c4_91, %c0_92, %c0_93] : memref<9x8x4xf32, #tpu.memory_space<vmem>>, vector<1x8x4xf32>
    %102 = vector.shape_cast %101 : vector<1x8x4xf32> to vector<8x4xf32>
    %cst_94 = arith.constant dense<0.000000e+00> : vector<8x64xf32>
    %103 = tpu.matmul %102, %100, %cst_94 {dimension_numbers = #tpu.dot_dimension_numbers<[1], [0], [0], [1], [0, 0, 1, 1], [], []>} : vector<8x4xf32>, vector<4x64xf32>, vector<8x64xf32> -> vector<8x64xf32>
    %104 = arith.addf %98, %103 : vector<8x64xf32>
    %c11 = arith.constant 11 : index
    %c0_95 = arith.constant 0 : index
    %c0_96 = arith.constant 0 : index
    %105 = vector.load %arg1[%c11, %c0_95, %c0_96] : memref<12x4x72xf32, #tpu.memory_space<vmem>>, vector<1x4x64xf32>
    %106 = vector.shape_cast %105 : vector<1x4x64xf32> to vector<4x64xf32>
    %c5_97 = arith.constant 5 : index
    %c0_98 = arith.constant 0 : index
    %c0_99 = arith.constant 0 : index
    %107 = vector.load %arg2[%c5_97, %c0_98, %c0_99] : memref<9x8x4xf32, #tpu.memory_space<vmem>>, vector<1x8x4xf32>
    %108 = vector.shape_cast %107 : vector<1x8x4xf32> to vector<8x4xf32>
    %cst_100 = arith.constant dense<0.000000e+00> : vector<8x64xf32>
    %109 = tpu.matmul %108, %106, %cst_100 {dimension_numbers = #tpu.dot_dimension_numbers<[1], [0], [0], [1], [0, 0, 1, 1], [], []>} : vector<8x4xf32>, vector<4x64xf32>, vector<8x64xf32> -> vector<8x64xf32>
    %110 = arith.addf %104, %109 : vector<8x64xf32>
    %c6_101 = arith.constant 6 : index
    %c0_102 = arith.constant 0 : index
    %c8_103 = arith.constant 8 : index
    %111 = vector.load %arg1[%c6_101, %c0_102, %c8_103] : memref<12x4x72xf32, #tpu.memory_space<vmem>>, vector<1x4x64xf32>
    %112 = vector.shape_cast %111 : vector<1x4x64xf32> to vector<4x64xf32>
    %c6_104 = arith.constant 6 : index
    %c0_105 = arith.constant 0 : index
    %c0_106 = arith.constant 0 : index
    %113 = vector.load %arg2[%c6_104, %c0_105, %c0_106] : memref<9x8x4xf32, #tpu.memory_space<vmem>>, vector<1x8x4xf32>
    %114 = vector.shape_cast %113 : vector<1x8x4xf32> to vector<8x4xf32>
    %cst_107 = arith.constant dense<0.000000e+00> : vector<8x64xf32>
    %115 = tpu.matmul %114, %112, %cst_107 {dimension_numbers = #tpu.dot_dimension_numbers<[1], [0], [0], [1], [0, 0, 1, 1], [], []>} : vector<8x4xf32>, vector<4x64xf32>, vector<8x64xf32> -> vector<8x64xf32>
    %116 = arith.addf %110, %115 : vector<8x64xf32>
    %c8_108 = arith.constant 8 : index
    %c0_109 = arith.constant 0 : index
    %c8_110 = arith.constant 8 : index
    %117 = vector.load %arg1[%c8_108, %c0_109, %c8_110] : memref<12x4x72xf32, #tpu.memory_space<vmem>>, vector<1x4x64xf32>
    %118 = vector.shape_cast %117 : vector<1x4x64xf32> to vector<4x64xf32>
    %c7_111 = arith.constant 7 : index
    %c0_112 = arith.constant 0 : index
    %c0_113 = arith.constant 0 : index
    %119 = vector.load %arg2[%c7_111, %c0_112, %c0_113] : memref<9x8x4xf32, #tpu.memory_space<vmem>>, vector<1x8x4xf32>
    %120 = vector.shape_cast %119 : vector<1x8x4xf32> to vector<8x4xf32>
    %cst_114 = arith.constant dense<0.000000e+00> : vector<8x64xf32>
    %121 = tpu.matmul %120, %118, %cst_114 {dimension_numbers = #tpu.dot_dimension_numbers<[1], [0], [0], [1], [0, 0, 1, 1], [], []>} : vector<8x4xf32>, vector<4x64xf32>, vector<8x64xf32> -> vector<8x64xf32>
    %122 = arith.addf %116, %121 : vector<8x64xf32>
    %c10_115 = arith.constant 10 : index
    %c0_116 = arith.constant 0 : index
    %c8_117 = arith.constant 8 : index
    %123 = vector.load %arg1[%c10_115, %c0_116, %c8_117] : memref<12x4x72xf32, #tpu.memory_space<vmem>>, vector<1x4x64xf32>
    %124 = vector.shape_cast %123 : vector<1x4x64xf32> to vector<4x64xf32>
    %c8_118 = arith.constant 8 : index
    %c0_119 = arith.constant 0 : index
    %c0_120 = arith.constant 0 : index
    %125 = vector.load %arg2[%c8_118, %c0_119, %c0_120] : memref<9x8x4xf32, #tpu.memory_space<vmem>>, vector<1x8x4xf32>
    %126 = vector.shape_cast %125 : vector<1x8x4xf32> to vector<8x4xf32>
    %cst_121 = arith.constant dense<0.000000e+00> : vector<8x64xf32>
    %127 = tpu.matmul %126, %124, %cst_121 {dimension_numbers = #tpu.dot_dimension_numbers<[1], [0], [0], [1], [0, 0, 1, 1], [], []>} : vector<8x4xf32>, vector<4x64xf32>, vector<8x64xf32> -> vector<8x64xf32>
    %128 = arith.addf %122, %127 : vector<8x64xf32>
    %cst_122 = arith.constant dense<0.000000e+00> : vector<8xf32>
    %129 = vector.multi_reduction <add>, %128, %cst_122 [1] : vector<8x64xf32> to vector<8xf32>
    %130 = vector.shape_cast %129 : vector<8xf32> to vector<8x1xf32>
    %cst_123 = arith.constant 1.562500e-02 : f32
    %131 = vector.broadcast %cst_123 : f32 to vector<8x1xf32>
    %132 = arith.mulf %130, %131 : vector<8x1xf32>
    %133 = arith.mulf %128, %128 : vector<8x64xf32>
    %cst_124 = arith.constant dense<0.000000e+00> : vector<8xf32>
    %134 = vector.multi_reduction <add>, %133, %cst_124 [1] : vector<8x64xf32> to vector<8xf32>
    %135 = vector.shape_cast %134 : vector<8xf32> to vector<8x1xf32>
    %cst_125 = arith.constant 1.562500e-02 : f32
    %136 = vector.broadcast %cst_125 : f32 to vector<8x1xf32>
    %137 = arith.mulf %135, %136 : vector<8x1xf32>
    %138 = arith.mulf %132, %132 : vector<8x1xf32>
    %139 = arith.subf %137, %138 : vector<8x1xf32>
    %140 = vector.broadcast %132 : vector<8x1xf32> to vector<8x64xf32>
    %141 = arith.subf %128, %140 : vector<8x64xf32>
    %cst_126 = arith.constant 9.99999974E-6 : f32
    %142 = vector.broadcast %cst_126 : f32 to vector<8x1xf32>
    %143 = arith.addf %139, %142 : vector<8x1xf32>
    %144 = math.rsqrt %143 : vector<8x1xf32>
    %145 = vector.broadcast %144 : vector<8x1xf32> to vector<8x64xf32>
    %146 = arith.mulf %141, %145 : vector<8x64xf32>
    %cst_127 = arith.constant 0.000000e+00 : f32
    %147 = vector.broadcast %cst_127 : f32 to vector<8x64xf32>
    %148 = arith.maximumf %146, %147 : vector<8x64xf32>
    %c1_128 = arith.constant 1 : index
    %c0_129 = arith.constant 0 : index
    %c0_130 = arith.constant 0 : index
    %149 = vector.load %arg3[%c1_128, %c0_129, %c0_130] : memref<2x8x64xf32, #tpu.memory_space<vmem>>, vector<1x8x64xf32>
    %150 = vector.shape_cast %149 : vector<1x8x64xf32> to vector<8x64xf32>
    %151 = vector.shape_cast %148 : vector<8x64xf32> to vector<1x8x64xf32>
    tpu.vector_store %arg3[%c1_128, %c0_129, %c0_130], %151 {strides = array<i32>} : memref<2x8x64xf32, #tpu.memory_space<vmem>>, vector<1x8x64xf32>,
    return
  }
  func.func @transform_0(%arg0: i32) -> (i32, i32, i32) {
    %c0_i32 = arith.constant 0 : i32
    %c0_i32_0 = arith.constant 0 : i32
    %c0_i32_1 = arith.constant 0 : i32
    %c0_i32_2 = arith.constant 0 : i32
    return %c0_i32, %c0_i32_0, %c0_i32_1 : i32, i32, i32
  }
  func.func @transform_1(%arg0: i32) -> (i32, i32, i32) {
    %c0_i32 = arith.constant 0 : i32
    %c0_i32_0 = arith.constant 0 : i32
    %c0_i32_1 = arith.constant 0 : i32
    %c0_i32_2 = arith.constant 0 : i32
    return %c0_i32, %c0_i32_0, %c0_i32_1 : i32, i32, i32
  }
  func.func @transform_2(%arg0: i32) -> (i32, i32, i32) {
    %c0_i32 = arith.constant 0 : i32
    %c0_i32_0 = arith.constant 0 : i32
    %c0_i32_1 = arith.constant 0 : i32
    %c0_i32_2 = arith.constant 0 : i32
    return %c0_i32, %c0_i32_0, %c0_i32_1 : i32, i32, i32
  }
}

</mosaic_0001>

<bundles_post_ra>
// kernel: tpu_custom_call.1
= control target key start
LH: loop header
LB: loop body
LE: loop exit
PB: predicated region body
PF: predicated region fallthrough
CT: control target
= control target key end

     0   :  { %s1758_s11 = smov 120   ;;  %v1759_v2 = vmov 0.0   ;;  %vm22_vm0 = vcmask 1043456   ;;  %vm18_vm1 = vcmask 31744   ;;  %vm1760_vm2 = vmmov 0   ;;  %s1956_s0 = inlined_call_operand.vmem [shape: f32[12,4,72], index: 0, kind: input, shape index: {}]   ;;  %s1957_s1 = inlined_call_operand.vmem [shape: f32[9,8,4], index: 1, kind: input, shape index: {}]   ;;  %s1958_s2 = inlined_call_operand.hbm [shape: f32[2,8,64], index: 2, kind: output, shape index: {}]  }
   0x1   :  { %v12_v0 = vld [vmem:[%s1956_s0] sm:$0xf]  ;;  %v1503_v1 = vld [vmem:[%s1956_s0 + $0x8] sm:$0xf]  ;;  %1602 = vmatprep.subr.mxu0 %v1759_v2  ;;  %v1534_v3 = vld [vmem:[%s1956_s0 + $0x18] sm:$0xf]  ;;  %1647 = vmatprep.subr.mxu1 %v1759_v2 }
   0x2   :  { %498 = vrot.lane.b32.xlu0 %v12_v0, %s1758_s11  ;;  %578 = vrot.lane.b32.xlu1 %v1503_v1, %s1758_s11  ;;  %v1504_v4 = vld [vmem:[%s1957_s1 + $0x8] sm:$0xff]  ;;  %v1535_v5 = vld [vmem:[%s1956_s0 + $0x20] sm:$0xf] }
   0x3   :  { %1603 = vmatpush3.msk.msra.mxu0 %vm22_vm0, %v1503_v1  ;;  %1604 = vmatprep.mubr.msk.f32.mxu0 %vm1760_vm2, %v1759_v2  ;;  %v1509_v6 = vld [vmem:[%s1956_s0 + $0x10] sm:$0xf]  ;;  %v1541_v7 = vld [vmem:[%s1956_s0 + $0x28] sm:$0xf] }
   0x4   :  { %1605 = vmatmul.mubr.msk.f32.vlgmr.msra.gmra.mrb[0].mxu0 %vm18_vm1, %v1504_v4  ;;  %1648 = vmatpush3.msk.msra.mxu1 %vm22_vm0, %v1535_v5 }
   0x5   :  { %1649 = vmatprep.mubr.msk.f32.mxu1 %vm1760_vm2, %v1759_v2  ;;  %1607 = vmatprep.subr.mxu0 %v1759_v2 }
   0x6   :  { %1233 = vrot.lane.b32.xlu0 %v1534_v3, %s1758_s11  ;;  %1312 = vrot.lane.b32.xlu1 %v1535_v5, %s1758_s11 }
   0x7   :  { %1650 = vmatmul.mubr.msk.f32.vlgmr.msra.gmra.mrb[0].mxu1 %vm18_vm1, %v1504_v4  ;;  %1609 = vmatprep.mubr.msk.f32.mxu0 %vm1760_vm2, %v1759_v2 }
   0x8   :  { %7 = vsyncpa [#allocation3], 0  ;;  %1608 = vmatpush3.msk.msra.mxu0 %vm22_vm0, %v12_v0  ;;  %1652 = vmatprep.subr.mxu1 %v1759_v2  ;;  %v13_v8 = vld [vmem:[%s1957_s1] sm:$0xff]  ;;  %v1510_v9 = vld [vmem:[%s1957_s1 + $0x10] sm:$0xff]  ;;  %vm736_vm3 = vcmask 523264  }
   0x9   :  { %1653 = vmatpush3.msk.msra.mxu1 %vm22_vm0, %v1534_v3  ;;  %1654 = vmatprep.mubr.msk.f32.mxu1 %vm1760_vm2, %v1759_v2  ;;  %v1513_v10 = vld [vmem:[%s1956_s0 + $0x4] sm:$0xf]  ;;  %v1545_v11 = vld [vmem:[%s1956_s0 + $0x1c] sm:$0xf]  ;;  %v1517_v13 = vld [vmem:[%s1956_s0 + $0xc] sm:$0xf] }
   0xa   :  { %658 = vrot.lane.b32.xlu0 %v1509_v6, %s1758_s11  ;;  %1391 = vrot.lane.b32.xlu1 %v1541_v7, %s1758_s11  ;;  %v1514_v12 = vld [vmem:[%s1957_s1 + $0x18] sm:$0xff]  ;;  %v1549_v14 = vld [vmem:[%s1956_s0 + $0x24] sm:$0xf] }
   0xb   :  { %1612 = vmatprep.subr.mxu0 %v1759_v2  ;;  %1657 = vmatprep.subr.mxu1 %v1759_v2  ;;  %v1518_v15 = vld [vmem:[%s1957_s1 + $0x20] sm:$0xff]  ;;  %v1521_v16 = vld [vmem:[%s1956_s0 + $0x14] sm:$0xf]  ;;  %v1553_v17 = vld [vmem:[%s1956_s0 + $0x2c] sm:$0xf] }
   0xc   :  { %1610 = vmatmul.mubr.msk.f32.vlgmr.msra.gmra.mrb[0].mxu0 %vm18_vm1, %v13_v8  ;;  %v1522_v18 = vld [vmem:[%s1957_s1 + $0x28] sm:$0xff]  ;;  %v1525_v19 = vld [vmem:[%s1957_s1 + $0x30] sm:$0xff]  ;;  %v1528_v24 = vld [vmem:[%s1957_s1 + $0x38] sm:$0xff] }
   0xd   :  { %1613 = vmatpush3.msk.msra.mxu0 %vm22_vm0, %v1509_v6  ;;  %1614 = vmatprep.mubr.msk.f32.mxu0 %vm1760_vm2, %v1759_v2  ;;  %v1531_v27 = vld [vmem:[%s1957_s1 + $0x40] sm:$0xff]  ;;  %s1761_s1 = smov [#allocation2]  }
   0xe   :  { %1617 = vmatprep.subr.mxu0 %v1759_v2  ;;  %s1492_s23 = sshll.u32 %s1761_s1, 4  ;;  %s1493_s23 = int_to_ptr.vmem [resolvable:$true] %s1492_s23 }
   0xf   :  { %1655 = vmatmul.mubr.msk.f32.vlgmr.msra.gmra.mrb[0].mxu1 %vm18_vm1, %v13_v8  ;;  %s1734_s24 = scalar_lea.vmem %s1493_s23, 256  ;;  %p1739_p1 = scmp.lt.s32.totalorder %s1493_s23, %s1493_s23 }
  0x10   :  { %1658 = vmatpush3.msk.msra.mxu1 %vm22_vm0, %v1541_v7  ;;  %1659 = vmatprep.mubr.msk.f32.mxu1 %vm1760_vm2, %v1759_v2  ;;  %p1735_p0 = scmp.ne.s32.totalorder %s1493_s23, %s1734_s24  ;;  %p1740_p2 = scmp.lt.s32.totalorder %s1734_s24, %s1734_s24 }
  0x11   :  { %1662 = vmatprep.subr.mxu1 %v1759_v2 }
  0x12   :  { %p1741_p3 = por %p1740_p2, %p1739_p1 }
  0x14   :  { %1615 = vmatmul.mubr.msk.f32.vlgmr.msra.gmra.mrb[0].mxu0 %vm18_vm1, %v1510_v9  ;;  %p1742_p4 = pnand %p1741_p3, %p1735_p0 }
  0x15   :  { %1618 = vmatpush3.msk.msra.mxu0 %vm22_vm0, %v1513_v10  ;;  %1619 = vmatprep.mubr.msk.f32.mxu0 %vm1760_vm2, %v1759_v2 }
  0x16   :  { %1622 = vmatprep.subr.mxu0 %v1759_v2 }
  0x17   :  { %1660 = vmatmul.mubr.msk.f32.vlgmr.msra.gmra.mrb[0].mxu1 %vm18_vm1, %v1510_v9 }
  0x18   :  { %1663 = vmatpush3.msk.msra.mxu1 %vm22_vm0, %v1545_v11  ;;  %1664 = vmatprep.mubr.msk.f32.mxu1 %vm1760_vm2, %v1759_v2 }
  0x19   :  { %1667 = vmatprep.subr.mxu1 %v1759_v2 }
  0x1c   :  { %1620 = vmatmul.mubr.msk.f32.vlgmr.msra.gmra.mrb[0].mxu0 %vm18_vm1, %v1514_v12 }
  0x1d   :  { %1623 = vmatpush3.msk.msra.mxu0 %vm22_vm0, %v1517_v13  ;;  %1624 = vmatprep.mubr.msk.f32.mxu0 %vm1760_vm2, %v1759_v2 }
  0x1e   :  { %1627 = vmatprep.subr.mxu0 %v1759_v2 }
  0x1f   :  { %1665 = vmatmul.mubr.msk.f32.vlgmr.msra.gmra.mrb[0].mxu1 %vm18_vm1, %v1514_v12 }
  0x20   :  { %1668 = vmatpush3.msk.msra.mxu1 %vm22_vm0, %v1549_v14  ;;  %1669 = vmatprep.mubr.msk.f32.mxu1 %vm1760_vm2, %v1759_v2 }
  0x21   :  { %1672 = vmatprep.subr.mxu1 %v1759_v2 }
  0x24   :  { %1625 = vmatmul.mubr.msk.f32.vlgmr.msra.gmra.mrb[0].mxu0 %vm18_vm1, %v1518_v15 }
  0x25   :  { %1628 = vmatpush3.msk.msra.mxu0 %vm22_vm0, %v1521_v16  ;;  %1629 = vmatprep.mubr.msk.f32.mxu0 %vm1760_vm2, %v1759_v2 }
  0x26   :  { %1632 = vmatprep.subr.mxu0 %v1759_v2 }
  0x27   :  { %1670 = vmatmul.mubr.msk.f32.vlgmr.msra.gmra.mrb[0].mxu1 %vm18_vm1, %v1518_v15 }
  0x28   :  { %1673 = vmatpush3.msk.msra.mxu1 %vm22_vm0, %v1553_v17  ;;  %1674 = vmatprep.mubr.msk.f32.mxu1 %vm1760_vm2, %v1759_v2 }
  0x29   :  { %1677 = vmatprep.subr.mxu1 %v1759_v2 }
  0x2c   :  { %1630 = vmatmul.mubr.msk.f32.vlgmr.msra.gmra.mrb[0].mxu0 %vm18_vm1, %v1522_v18 }
  0x2d   :  { %1634 = vmatprep.mubr.msk.f32.mxu0 %vm1760_vm2, %v1759_v2 }
  0x2f   :  { %1675 = vmatmul.mubr.msk.f32.vlgmr.msra.gmra.mrb[0].mxu1 %vm18_vm1, %v1522_v18 }
  0x30   :  { %1679 = vmatprep.mubr.msk.f32.mxu1 %vm1760_vm2, %v1759_v2 }
  0x74   :  { %v499_v20 = vpop.permute.xlu0 %498  ;;  %v579_v21 = vpop.permute.xlu1 %578 }
  0x75   :  { %1633 = vmatpush3.msk.msra.mxu0 %vm22_vm0, %v499_v20 }
  0x76   :  { %1635 = vmatmul.mubr.msk.f32.vlgmr.msra.gmra.mrb[0].mxu0 %vm18_vm1, %v1525_v19  ;;  %1637 = vmatprep.subr.mxu0 %v1759_v2 }
  0x77   :  { %1638 = vmatpush3.msk.msra.mxu0 %vm22_vm0, %v579_v21  ;;  %1639 = vmatprep.mubr.msk.f32.mxu0 %vm1760_vm2, %v1759_v2 }
  0x78   :  { %v1234_v22 = vpop.permute.xlu0 %1233  ;;  %1642 = vmatprep.subr.mxu0 %v1759_v2  ;;  %v1313_v23 = vpop.permute.xlu1 %1312 }
  0x79   :  { %1678 = vmatpush3.msk.msra.mxu1 %vm22_vm0, %v1234_v22 }
  0x7a   :  { %1680 = vmatmul.mubr.msk.f32.vlgmr.msra.gmra.mrb[0].mxu1 %vm18_vm1, %v1525_v19  ;;  %1682 = vmatprep.subr.mxu1 %v1759_v2 }
  0x7b   :  { %1683 = vmatpush3.msk.msra.mxu1 %vm22_vm0, %v1313_v23  ;;  %1684 = vmatprep.mubr.msk.f32.mxu1 %vm1760_vm2, %v1759_v2 }
  0x7c   :  { %v659_v25 = vpop.permute.xlu0 %658  ;;  %1687 = vmatprep.subr.mxu1 %v1759_v2  ;;  %v1392_v26 = vpop.permute.xlu1 %1391 }
  0x7e   :  { %1640 = vmatmul.mubr.msk.f32.vlgmr.msra.gmra.mrb[0].mxu0 %vm18_vm1, %v1528_v24 }
  0x7f   :  { %1643 = vmatpush3.msk.msra.mxu0 %vm22_vm0, %v659_v25  ;;  %1644 = vmatprep.mubr.msk.f32.mxu0 %vm1760_vm2, %v1759_v2 }
  0x82   :  { %1685 = vmatmul.mubr.msk.f32.vlgmr.msra.gmra.mrb[0].mxu1 %vm18_vm1, %v1528_v24 }
  0x83   :  { %1688 = vmatpush3.msk.msra.mxu1 %vm22_vm0, %v1392_v26  ;;  %1689 = vmatprep.mubr.msk.f32.mxu1 %vm1760_vm2, %v1759_v2 }
  0x86   :  { %1645 = vmatmul.mubr.msk.f32.vlgmr.msra.gmra.mrb[0].mxu0 %vm18_vm1, %v1531_v27 }
  0x8a   :  { %1690 = vmatmul.mubr.msk.f32.vlgmr.msra.gmra.mrb[0].mxu1 %vm18_vm1, %v1531_v27 }
 0x159   :  { %v731_v28 = vpop.f32.mrb[0].mxu0 }
 0x15a   :  { %v1646_v29 = vpop.f32.mrb[1].mxu0  ;;  %v737_v30 = vsel %vm736_vm3, %v731_v28, 0.0  ;;  %v741_v31 = vmul.f32 %v731_v28, %v731_v28 }
 0x15b   :  { %738 = vadd.xlane.f32.xlu0 %v737_v30 }
 0x15c   :  { %v742_v35 = vsel %vm736_vm3, %v741_v31, 0.0 }
 0x15d   :  { %v1464_v32 = vpop.f32.mrb[0].mxu1 }
 0x15e   :  { %v1691_v33 = vpop.f32.mrb[1].mxu1  ;;  %v1469_v34 = vsel %vm736_vm3, %v1464_v32, 0.0  ;;  %v1473_v36 = vmul.f32 %v1464_v32, %v1464_v32 }
 0x15f   :  { %1470 = vadd.xlane.f32.xlu1 %v1469_v34  ;;  %743 = vadd.xlane.f32.xlu0 %v742_v35 }
 0x160   :  { %v1474_v37 = vsel %vm736_vm3, %v1473_v36, 0.0 }
 0x163   :  { %1475 = vadd.xlane.f32.xlu0 %v1474_v37 }
 0x1e8   :  { %v739_v38 = vpop.xlane.xlu0 %738 }
 0x1e9   :  { %v740_v39 = vmul.f32 0.015625, %v739_v38 }
 0x1eb   :  { %v746_v42 = vmul.f32 %v740_v39, %v740_v39  ;;  %v748_v52 = vsub.f32 %v731_v28, %v740_v39 }
 0x1ec   :  { %v1471_v40 = vpop.xlane.xlu1 %1470  ;;  %v744_v41 = vpop.xlane.xlu0 %743 }
 0x1ed   :  { %v1472_v43 = vmul.f32 0.015625, %v1471_v40  ;;  %v745_v44 = vmul.f32 0.015625, %v744_v41 }
 0x1ef   :  { %v747_v45 = vsub.f32 %v745_v44, %v746_v42  ;;  %v1478_v47 = vmul.f32 %v1472_v43, %v1472_v43  ;;  %v1480_v55 = vsub.f32 %v1464_v32, %v1472_v43 }
 0x1f0   :  { %v1476_v46 = vpop.xlane.xlu0 %1475 }
 0x1f1   :  { %v749_v48 = vadd.f32 1e-05, %v747_v45  ;;  %v1477_v49 = vmul.f32 0.015625, %v1476_v46 }
 0x1f3   :  { %1730 = vrsqrt.f32 %v749_v48  ;;  %v1479_v50 = vsub.f32 %v1477_v49, %v1478_v47 }
 0x1f5   :  { %v1481_v51 = vadd.f32 1e-05, %v1479_v50 }
 0x1f7   :  { %1732 = vrsqrt.f32 %v1481_v51 }
 0x1fd   :  { %v1731_v53 = vpop.eup %1730 }
 0x1fe   :  { %v751_v54 = vmul.f32 %v1731_v53, %v748_v52 }
 0x200   :  { %v752_v56 = vmax.f32 %v751_v54, 0.0 }
 0x201   :  { %v1733_v57 = vpop.eup %1732 }
 0x202   :  { %753 = vst.msk [vmem:[#allocation2] sm:$0xff] %vm736_vm3, %v752_v56  ;;  %v1483_v58 = vmul.f32 %v1733_v57, %v1480_v55 }
 0x204   :  { %v1484_v59 = vmax.f32 %v1483_v58, 0.0 }
 0x206   :  { %1486 = vst.msk [vmem:[#allocation2 + $0x8] sm:$0xff] %vm736_vm3, %v1484_v59 }
 0x207   :  { %1745 = shalt.err (!%p1742_p4)
}
 0x208   :  { %s1746_s27 = scalar_lea.hbm %s1958_s2, 256 }
 0x209   :  { %p1747_p5 = scmp.ne.s32.totalorder %s1958_s2, %s1746_s27  ;;  %p1750_p6 = scmp.lt.u32.totalorder %s1746_s27, %s1958_s2 }
 0x20b   :  { %p1752_p7 = pnand %p1750_p6, %p1747_p5 }
 0x20d   :  { %1755 = shalt.err (!%p1752_p7)
}
 0x20e   :  { %s1762_s4 = smov 128   ;;  %s1763_s5 = smov 8  }
 0x20f   :  { %1498 = dma.vmem_to_hbm [thread:$0]  %s1493_s23, 256, %s1958_s2, [#allocation3], %s1762_s4, %s1762_s4, %s1763_s5  }
 0x210   :  { %1756 = dma.done.wait [#allocation3], 256  }
 0x211   :  { %1757 = vsyncadd [#allocation3], 4294967040 }
 0x212   :  { %1502 = vsyncpa [#allocation3], 1 }

</bundles_post_ra>
